<compile_context>
chip_gen: v7x
topology: tpu7x:2x2x1
jax: 0.10.0
libtpu: 0.0.40
codegen_flags: <defaults>
</compile_context>

<pallas_src>
import numpy as np
import jax
import jax.numpy as jnp
from jax import lax
from jax.experimental import pallas as pl
from jax.experimental.pallas import tpu as pltpu


def _round_up(x, m):
    return ((x + m - 1) // m) * m


# ---------------------------------------------------------------------------
# Kernel 1: D[b, i, j] = ||x_bi - y_bj||^2  (== torch.pow(x - y, 2).sum(3))
# ---------------------------------------------------------------------------
def _pairwise_sq_dist(X, Y):
    X = jnp.asarray(X, jnp.float32)
    Y = jnp.asarray(Y, jnp.float32)
    B, N, Dm = X.shape
    _, M, _ = Y.shape

    # batch chunk: as large as possible while tiles (double-buffered) fit VMEM
    per_b_bytes = 2 * 4 * (N * Dm + M * Dm + N * M)
    Bb = 1
    for cand in (8, 4, 2, 1):
        if B % cand == 0 and cand * per_b_bytes <= (12 << 20):
            Bb = cand
            break

    def kernel(x_ref, y_ref, d_ref):
        x = x_ref[...]                                           # (Bb, N, Dm)
        y = y_ref[...]                                           # (Bb, M, Dm)
        xx = jnp.sum(x * x, axis=-1, keepdims=True)              # (Bb, N, 1)
        yy = jnp.sum(y * y, axis=-1)[:, None, :]                 # (Bb, 1, M)
        xy = jnp.einsum('bnd,bmd->bnm', x, y,
                        preferred_element_type=jnp.float32)      # MXU
        d_ref[...] = jnp.maximum(xx + yy - 2.0 * xy, 0.0)

    return pl.pallas_call(
        kernel,
        out_shape=jax.ShapeDtypeStruct((B, N, M), jnp.float32),
        grid=(B // Bb,),
        in_specs=[pl.BlockSpec((Bb, N, Dm), lambda b: (b, 0, 0)),
                  pl.BlockSpec((Bb, M, Dm), lambda b: (b, 0, 0))],
        out_specs=pl.BlockSpec((Bb, N, M), lambda b: (b, 0, 0)),
        compiler_params=pltpu.CompilerParams(
            dimension_semantics=("parallel",),
            vmem_limit_bytes=48 * 1024 * 1024),
    )(X, Y)


# ---------------------------------------------------------------------------
# Kernel 2: soft-DTW dynamic program as an anti-diagonal wavefront.
#   R[i, j] = D[i-1, j-1] + softmin_gamma(R[i-1,j-1], R[i-1,j], R[i,j-1])
# Cells on one anti-diagonal (i + j = const) are independent -> one vector op.
# ---------------------------------------------------------------------------
def _softdtw_dp(D, gamma, bandwidth, initial_value, return_matrix=False):
    D = jnp.asarray(D, jnp.float32)
    B, N, M = D.shape
    gamma = float(gamma)
    bandwidth = float(bandwidth)
    init = float(initial_value)
    inv_gamma = 1.0 / gamma

    K = N + M - 1                       # number of anti-diagonals of D
    BB = 8                              # batch sublane block
    Bpad = _round_up(B, BB)
    n_bc = Bpad // BB
    Lpad = _round_up(N + 1, 128)        # lane i <-> DP row index i in [0, N]

    # ---- skew D into anti-diagonal layout (pad/reshape, no gather):
    #      D_diag[k, b, i] = D[b, i-1, (k+1) - i]   (zeros outside the band).
    Dp = jnp.pad(D, ((0, Bpad - B), (0, 0), (0, N)))            # (Bpad, N, M+N)
    Dsk = Dp.reshape(Bpad, N * (M + N))[:, : N * K].reshape(Bpad, N, K)
    Dsk = jnp.transpose(Dsk, (2, 0, 1))                          # (K, Bpad, N)
    Dsk = jnp.pad(Dsk, ((0, 0), (0, 0), (1, Lpad - N - 1)))      # (K, Bpad, Lpad)

    def kernel(*refs):
        d_ref, score_ref = refs[0], refs[1]
        if return_matrix:
            rsk_ref, p1_ref, p2_ref = refs[2], refs[3], refs[4]
        else:
            rsk_ref, p1_ref, p2_ref = None, refs[2], refs[3]

        k = pl.program_id(1)
        lane = lax.broadcasted_iota(jnp.int32, (BB, Lpad), 1)

        @pl.when(k == 0)
        def _init():
            # diagonal d=0: R[0,0] = 0, everything else = initial_value
            p2_ref[...] = jnp.where(lane == 0, jnp.float32(0.0),
                                    jnp.float32(init))
            # diagonal d=1: R[0,1] = R[1,0] = initial_value
            p1_ref[...] = jnp.full((BB, Lpad), init, jnp.float32)

        p1 = p1_ref[...]                            # diagonal d-1
        p2 = p2_ref[...]                            # diagonal d-2
        p1s = pltpu.roll(p1, shift=1, axis=1)       # p1s[i] = p1[i-1]  (XLU)
        p2s = pltpu.roll(p2, shift=1, axis=1)       # p2s[i] = p2[i-1]

        # softmin over (R[i-1,j-1], R[i-1,j], R[i,j-1]) for every i on diag d
        r0 = -p2s * inv_gamma
        r1 = -p1s * inv_gamma
        r2 = -p1 * inv_gamma
        rmax = jnp.maximum(jnp.maximum(r0, r1), r2)
        rsum = (jnp.exp(r0 - rmax) + jnp.exp(r1 - rmax) + jnp.exp(r2 - rmax))
        softmin = -gamma * (jnp.log(rsum) + rmax)
        val = d_ref[0] + softmin

        d = k + 2                                    # DP diagonal index (i + j)
        valid = ((lane >= jnp.maximum(1, d - M)) &
                 (lane <= jnp.minimum(N, d - 1)))
        if bandwidth > 0.0:                          # Sakoe-Chiba band (static)
            valid &= (jnp.abs(2 * lane - d).astype(jnp.float32) <= bandwidth)
        cur = jnp.where(valid, val, jnp.float32(init))

        p2_ref[...] = p1
        p1_ref[...] = cur
        if return_matrix:
            rsk_ref[0] = cur

        @pl.when(k == K - 1)
        def _final():
            score_ref[...] = cur[:, N:N + 1]         # R[N, M]

    out_shape = [jax.ShapeDtypeStruct((Bpad, 1), jnp.float32)]
    out_specs = [pl.BlockSpec((BB, 1), lambda bc, k: (bc, 0))]
    if return_matrix:
        out_shape.append(jax.ShapeDtypeStruct((K, Bpad, Lpad), jnp.float32))
        out_specs.append(pl.BlockSpec((1, BB, Lpad), lambda bc, k: (k, bc, 0)))

    results = pl.pallas_call(
        kernel,
        out_shape=out_shape,
        grid=(n_bc, K),
        in_specs=[pl.BlockSpec((1, BB, Lpad), lambda bc, k: (k, bc, 0))],
        out_specs=out_specs,
        scratch_shapes=[pltpu.VMEM((BB, Lpad), jnp.float32),
                        pltpu.VMEM((BB, Lpad), jnp.float32)],
        compiler_params=pltpu.CompilerParams(
            dimension_semantics=("parallel", "arbitrary"),
            vmem_limit_bytes=32 * 1024 * 1024),
    )(Dsk)

    scores = results[0][:B, 0]
    if not return_matrix:
        return scores

    # ---- un-skew R (pad/reshape glue):
    #      interior[b, i0, j0] = R_sk[i0 + j0, b, i0 + 1]
    R_sk = results[1]
    A = jnp.transpose(R_sk[:, :B, 1:N + 1], (1, 2, 0))           # (B, N, K)
    A = jnp.pad(A.reshape(B, N * K), ((0, 0), (0, N)))
    A = A.reshape(B, N, K + 1)[:, :, :M]                          # (B, N, M)
    R = jnp.full((B, N + 2, M + 2), init, jnp.float32)
    R = R.at[:, 0, 0].set(0.0)
    R = R.at[:, 1:N + 1, 1:M + 1].set(A)
    return R


# ---------------------------------------------------------------------------
# Module-equivalent wrapper (forward semantics of the PyTorch SoftDTW).
# ---------------------------------------------------------------------------
class SoftDTW:
    def __init__(self, use_cuda=False, gamma=1.0, normalize=False,
                 bandwidth=None, dist_func=None):
        del use_cuda  # TPU Pallas kernel; flag kept for API parity only.
        self.gamma = float(gamma)
        self.normalize = normalize
        self.bandwidth = 0.0 if bandwidth is None else float(bandwidth)
        self.dist_func = dist_func if dist_func is not None else _pairwise_sq_dist

    def __call__(self, X, Y, is_return_matrix=False, initial_value=float("inf")):
        return self.forward(X, Y, is_return_matrix, initial_value)

    def forward(self, X, Y, is_return_matrix=False, initial_value=float("inf")):
        bx, lx, dx = X.shape
        by, ly, dy = Y.shape
        assert bx == by and dx == dy
        if self.normalize:
            x = jnp.concatenate([X, X, Y], axis=0)
            y = jnp.concatenate([Y, X, Y], axis=0)
            D = self.dist_func(x, y)
            out = _softdtw_dp(D, self.gamma, self.bandwidth, initial_value,
                              return_matrix=is_return_matrix)
            out_xy, out_xx, out_yy = jnp.split(out, 3, axis=0)
            return out_xy - 0.5 * (out_xx + out_yy)
        D = self.dist_func(X, Y)
        self.D_xy = D
        return _softdtw_dp(D, self.gamma, self.bandwidth, initial_value,
                           return_matrix=is_return_matrix)


# ---------------------------------------------------------------------------
# Pure-numpy reference (mirrors the original CPU implementation).
# ---------------------------------------------------------------------------
def _softdtw_reference(X, Y, gamma, bandwidth=0.0):
    X = np.asarray(X, np.float64)
    Y = np.asarray(Y, np.float64)
    B, N, _ = X.shape
    M = Y.shape[1]
    D = ((X[:, :, None, :] - Y[:, None, :, :]) ** 2).sum(-1)
    R = np.full((B, N + 2, M + 2), np.inf)
    R[:, 0, 0] = 0.0
    for b in range(B):
        for j in range(1, M + 1):
            for i in range(1, N + 1):
                if 0 < bandwidth < abs(i - j):
                    continue
                r0 = -R[b, i - 1, j - 1] / gamma
                r1 = -R[b, i - 1, j] / gamma
                r2 = -R[b, i, j - 1] / gamma
                rmax = max(r0, r1, r2)
                rsum = (np.exp(r0 - rmax) + np.exp(r1 - rmax) +
                        np.exp(r2 - rmax))
                R[b, i, j] = D[b, i - 1, j - 1] - gamma * (np.log(rsum) + rmax)
    return R


if __name__ == "__main__":
    key = jax.random.PRNGKey(0)
    kx, ky = jax.random.split(key)
    B, N, M, Dm = 2, 8, 8, 32
    X = jax.random.normal(kx, (B, N, Dm), dtype=jnp.float32)
    Y = jax.random.normal(ky, (B, M, Dm), dtype=jnp.float32)

    # default path: (B,) soft-DTW scores
    sdtw = SoftDTW(use_cuda=False, gamma=1.0, normalize=False, bandwidth=None)
    scores = jax.block_until_ready(sdtw(X, Y))
    assert scores.shape == (B,)
    Rref = _softdtw_reference(np.asarray(X), np.asarray(Y), gamma=1.0)
    np.testing.assert_allclose(np.asarray(scores), Rref[:, -2, -2],
                               rtol=1e-3, atol=1e-3)

    # full alignment matrix path
    R_full = jax.block_until_ready(sdtw(X, Y, is_return_matrix=True))
    assert R_full.shape == (B, N + 2, M + 2)
    np.testing.assert_allclose(np.asarray(R_full[:, 1:N + 1, 1:M + 1]),
                               Rref[:, 1:N + 1, 1:M + 1], rtol=1e-3, atol=1e-3)

    # Sakoe-Chiba band path
    sdtw_band = SoftDTW(use_cuda=False, gamma=0.5, normalize=False, bandwidth=2.0)
    sb = jax.block_until_ready(sdtw_band(X, Y))
    Rb = _softdtw_reference(np.asarray(X), np.asarray(Y), gamma=0.5, bandwidth=2.0)
    np.testing.assert_allclose(np.asarray(sb), Rb[:, -2, -2],
                               rtol=1e-3, atol=1e-3)

    print("KERNEL_OK")
</pallas_src>

<mosaic_0001>
module attributes {stable_mosaic.version = 11 : i64} {
  func.func @kernel(%arg0: i32, %arg1: memref<2x8x32xf32, #tpu.memory_space<vmem>>, %arg2: memref<2x8x32xf32, #tpu.memory_space<vmem>>, %arg3: memref<2x8x8xf32, #tpu.memory_space<vmem>>) attributes {dimension_semantics = [#tpu.dimension_semantics<parallel>], iteration_bounds = array<i64: 1>, scalar_prefetch = 0 : i64, scratch_operands = 0 : i64, tpu.core_type = #tpu.core_type<tc>, window_params = [{transform_indices = @transform_0, window_bounds = array<i64: 2, 8, 32>}, {transform_indices = @transform_1, window_bounds = array<i64: 2, 8, 32>}, {transform_indices = @transform_2, window_bounds = array<i64: 2, 8, 8>}]} {
    %c0 = arith.constant 0 : index
    %c0_0 = arith.constant 0 : index
    %c0_1 = arith.constant 0 : index
    %0 = vector.load %arg1[%c0, %c0_0, %c0_1] : memref<2x8x32xf32, #tpu.memory_space<vmem>>, vector<2x8x32xf32>
    %c0_2 = arith.constant 0 : index
    %c0_3 = arith.constant 0 : index
    %c0_4 = arith.constant 0 : index
    %1 = vector.load %arg2[%c0_2, %c0_3, %c0_4] : memref<2x8x32xf32, #tpu.memory_space<vmem>>, vector<2x8x32xf32>
    %2 = arith.mulf %0, %0 : vector<2x8x32xf32>
    %cst = arith.constant dense<0.000000e+00> : vector<2x8xf32>
    %3 = vector.multi_reduction <add>, %2, %cst [2] : vector<2x8x32xf32> to vector<2x8xf32>
    %4 = vector.shape_cast %3 : vector<2x8xf32> to vector<2x8x1xf32>
    %5 = arith.mulf %1, %1 : vector<2x8x32xf32>
    %cst_5 = arith.constant dense<0.000000e+00> : vector<2x8xf32>
    %6 = vector.multi_reduction <add>, %5, %cst_5 [2] : vector<2x8x32xf32> to vector<2x8xf32>
    %7 = vector.shape_cast %6 : vector<2x8xf32> to vector<2x1x8xf32>
    "tpu.trace_start"() <{level = 10 : i32, message = "bnd,bmd->bnm"}> : () -> ()
    %cst_6 = arith.constant dense<0.000000e+00> : vector<2x8x8xf32>
    %8 = tpu.matmul %0, %1, %cst_6 {dimension_numbers = #tpu.dot_dimension_numbers<[2], [2], [1], [1], [0, 0, 0, 1, 1, 1], [0], [0]>} : vector<2x8x32xf32>, vector<2x8x32xf32>, vector<2x8x8xf32> -> vector<2x8x8xf32>
    "tpu.trace_stop"() : () -> ()
    %9 = vector.broadcast %4 : vector<2x8x1xf32> to vector<2x8x8xf32>
    %10 = vector.broadcast %7 : vector<2x1x8xf32> to vector<2x8x8xf32>
    %11 = arith.addf %9, %10 : vector<2x8x8xf32>
    %cst_7 = arith.constant 2.000000e+00 : f32
    %12 = vector.broadcast %cst_7 : f32 to vector<2x8x8xf32>
    %13 = arith.mulf %12, %8 : vector<2x8x8xf32>
    %14 = arith.subf %11, %13 : vector<2x8x8xf32>
    %cst_8 = arith.constant 0.000000e+00 : f32
    %15 = vector.broadcast %cst_8 : f32 to vector<2x8x8xf32>
    %16 = arith.maximumf %14, %15 : vector<2x8x8xf32>
    %c0_9 = arith.constant 0 : index
    %c0_10 = arith.constant 0 : index
    %c0_11 = arith.constant 0 : index
    %17 = vector.load %arg3[%c0_9, %c0_10, %c0_11] : memref<2x8x8xf32, #tpu.memory_space<vmem>>, vector<2x8x8xf32>
    tpu.vector_store %arg3[%c0_9, %c0_10, %c0_11], %16 {strides = array<i32>} : memref<2x8x8xf32, #tpu.memory_space<vmem>>, vector<2x8x8xf32>,
    return
  }
  func.func @transform_0(%arg0: i32) -> (i32, i32, i32) {
    %c0_i32 = arith.constant 0 : i32
    %c0_i32_0 = arith.constant 0 : i32
    %c0_i32_1 = arith.constant 0 : i32
    return %arg0, %c0_i32, %c0_i32_0 : i32, i32, i32
  }
  func.func @transform_1(%arg0: i32) -> (i32, i32, i32) {
    %c0_i32 = arith.constant 0 : i32
    %c0_i32_0 = arith.constant 0 : i32
    %c0_i32_1 = arith.constant 0 : i32
    return %arg0, %c0_i32, %c0_i32_0 : i32, i32, i32
  }
  func.func @transform_2(%arg0: i32) -> (i32, i32, i32) {
    %c0_i32 = arith.constant 0 : i32
    %c0_i32_0 = arith.constant 0 : i32
    %c0_i32_1 = arith.constant 0 : i32
    return %arg0, %c0_i32, %c0_i32_0 : i32, i32, i32
  }
}

</mosaic_0001>

<bundles_post_ra>
// kernel: tpu_custom_call.1
= control target key start
LH: loop header
LB: loop body
LE: loop exit
PB: predicated region body
PF: predicated region fallthrough
CT: control target
= control target key end

     0   :  { %7 = vsyncpa [#allocation3], 0  ;;  %s446_s0 = inlined_call_operand.hbm [shape: f32[2,8,32], index: 0, kind: input, shape index: {}]   ;;  %s447_s1 = inlined_call_operand.hbm [shape: f32[2,8,32], index: 1, kind: input, shape index: {}]   ;;  %s448_s2 = inlined_call_operand.hbm [shape: f32[2,8,8], index: 2, kind: output, shape index: {}]  }
   0x1   :  { %8 = vsyncpa [#allocation6], 0 }
   0x2   :  { %9 = vsyncpa [#allocation4], 0  ;;  %s371_s9 = smov [#allocation2]   ;;  %s299_s13 = scalar_lea.hbm %s446_s0, 256 }
   0x3   :  { %s15_s10 = sshll.u32 %s371_s9, 4  ;;  %p300_p0 = scmp.ne.s32.totalorder %s446_s0, %s299_s13  ;;  %s16_s10 = int_to_ptr.vmem [resolvable:$true] %s15_s10 }
   0x4   :  { %p303_p1 = scmp.lt.u32.totalorder %s299_s13, %s446_s0 }
   0x6   :  { %p305_p2 = pnand %p303_p1, %p300_p0 }
   0x8   :  { %308 = shalt.err (!%p305_p2)
}
   0x9   :  { %s309_s18 = scalar_lea.vmem %s16_s10, 256  ;;  %p314_p4 = scmp.lt.s32.totalorder %s16_s10, %s16_s10 }
   0xa   :  { %p310_p3 = scmp.ne.s32.totalorder %s16_s10, %s309_s18  ;;  %p315_p5 = scmp.lt.s32.totalorder %s309_s18, %s309_s18 }
   0xc   :  { %p316_p6 = por %p315_p5, %p314_p4 }
   0xe   :  { %p317_p7 = pnand %p316_p6, %p310_p3 }
  0x10   :  { %320 = shalt.err (!%p317_p7)
}
  0x11   :  { %s372_s19 = smov 128   ;;  %s373_s20 = smov 8  }
  0x12   :  { %21 = dma.hbm_to_vmem [thread:$0]  %s446_s0, 256, %s16_s10, [#allocation3], %s372_s19, %s372_s19, %s373_s20  }
  0x13   :  { %s374_s23 = smov [#allocation5]   ;;  %s321_s27 = scalar_lea.hbm %s447_s1, 256 }
  0x14   :  { %s27_s24 = sshll.u32 %s374_s23, 4  ;;  %p322_p8 = scmp.ne.s32.totalorder %s447_s1, %s321_s27  ;;  %s28_s24 = int_to_ptr.vmem [resolvable:$true] %s27_s24 }
  0x15   :  { %p325_p9 = scmp.lt.u32.totalorder %s321_s27, %s447_s1 }
  0x17   :  { %p327_p10 = pnand %p325_p9, %p322_p8 }
  0x19   :  { %330 = shalt.err (!%p327_p10)
}
  0x1a   :  { %s331_s4 = scalar_lea.vmem %s28_s24, 256  ;;  %p336_p12 = scmp.lt.s32.totalorder %s28_s24, %s28_s24 }
  0x1b   :  { %p332_p11 = scmp.ne.s32.totalorder %s28_s24, %s331_s4  ;;  %p337_p13 = scmp.lt.s32.totalorder %s331_s4, %s331_s4 }
  0x1d   :  { %p338_p0 = por %p337_p13, %p336_p12 }
  0x1f   :  { %p339_p1 = pnand %p338_p0, %p332_p11 }
  0x21   :  { %342 = shalt.err (!%p339_p1)
}
  0x22   :  { %33 = dma.hbm_to_vmem [thread:$0]  %s447_s1, 256, %s28_s24, [#allocation6], %s372_s19, %s372_s19, %s373_s20  }
  0x23   :  { %365 = dma.done.wait [#allocation3], 256  }
  0x24   :  { %366 = vsyncadd [#allocation3], 4294967040 }
  0x25   :  { %367 = dma.done.wait [#allocation6], 256  }
  0x26   :  { %368 = vsyncadd [#allocation6], 4294967040  ;;  %v375_v0 = vmov 0.0   ;;  %vm376_vm0 = vmmov 0   ;;  %vm46_vm1 = vcmask 261120   ;;  %v42_v1 = vld [vmem:[#allocation5] sm:$0xff]  ;;  %v215_v13 = vlaneseq }
  0x27   :  { %282 = vmatprep.subr.mxu0 %v375_v0  ;;  %287 = vmatprep.subr.mxu1 %v375_v0  ;;  %v43_v2 = vld [vmem:[#allocation5 + $0x8] sm:$0xff]  ;;  %v40_v3 = vld [vmem:[#allocation2] sm:$0xff]  ;;  %v41_v4 = vld [vmem:[#allocation2 + $0x8] sm:$0xff]  ;;  %v53_v5 = vmul.f32 %v42_v1, %v42_v1  ;;  %s377_s1 = smov [#allocation7]   ;;  %vm253_vm2 = vcmask 64512  }
  0x28   :  { %284 = vmatprep.mubr.msk.f32.mxu0 %vm376_vm0, %v375_v0  ;;  %289 = vmatprep.mubr.msk.f32.mxu1 %vm376_vm0, %v375_v0  ;;  %v44_v6 = vmul.f32 %v40_v3, %v40_v3  ;;  %v54_v7 = vmul.f32 %v43_v2, %v43_v2  ;;  %v45_v8 = vmul.f32 %v41_v4, %v41_v4  ;;  %v216_v15 = vand.u32 127, %v215_v13  ;;  %s261_s6 = sshll.u32 %s377_s1, 4  ;;  %s262_s6 = int_to_ptr.vmem [resolvable:$true] %s261_s6 }
  0x29   :  { %283 = vmatpush3.xpose.msk.msra.mxu0 %vm46_vm1, %v42_v1  ;;  %288 = vmatpush3.xpose.msk.msra.mxu1 %vm46_vm1, %v43_v2  ;;  %v55_v9 = vsel %vm46_vm1, %v53_v5, 0.0  ;;  %v218_v16 = vshrl.u32 %v215_v13, 7  ;;  %s343_s7 = scalar_lea.vmem %s262_s6, 256  ;;  %p348_p3 = scmp.lt.s32.totalorder %s262_s6, %s262_s6 }
  0x2a   :  { %v47_v10 = vsel %vm46_vm1, %v44_v6, 0.0  ;;  %56 = vadd.xlane.f32.xlu0 %v55_v9  ;;  %v58_v11 = vsel %vm46_vm1, %v54_v7, 0.0  ;;  %v50_v12 = vsel %vm46_vm1, %v45_v8, 0.0  ;;  %p344_p2 = scmp.ne.s32.totalorder %s262_s6, %s343_s7  ;;  %p349_p4 = scmp.lt.s32.totalorder %s343_s7, %s343_s7 }
  0x2b   :  { %48 = vadd.xlane.f32.xlu1 %v47_v10  ;;  %v219_v19 = vsub.s32 %v216_v15, %v218_v16 }
  0x2c   :  { %285 = vmatmul.mubr.msk.f32.vlgmr.msra.gmra.mrb[0].mxu0 %vm46_vm1, %v40_v3  ;;  %290 = vmatmul.mubr.msk.f32.vlgmr.msra.gmra.mrb[0].mxu1 %vm46_vm1, %v41_v4  ;;  %p350_p5 = por %p349_p4, %p348_p3 }
  0x2e   :  { %59 = vadd.xlane.f32.xlu0 %v58_v11  ;;  %p351_p6 = pnand %p350_p5, %p344_p2 }
  0x2f   :  { %51 = vadd.xlane.f32.xlu1 %v50_v12 }
  0xb7   :  { %v57_v14 = vpop.xlane.xlu0 %56 }
  0xb8   :  { %v49_v17 = vpop.xlane.xlu1 %48  ;;  %v220_v22 = vrot.slane %v57_v14, %v219_v19 }
  0xba   :  { %v245_v26 = vadd.f32 %v220_v22, %v49_v17 }
  0xbb   :  { %v60_v18 = vpop.xlane.xlu0 %59 }
  0xbc   :  { %v224_v20 = vrot.slane %v60_v18, %v219_v19  ;;  %v52_v21 = vpop.xlane.xlu1 %51 }
  0xbe   :  { %v246_v23 = vadd.f32 %v224_v20, %v52_v21 }
  0xff   :  { %v133_v24 = vpop.f32.mrb[0].mxu0  ;;  %v209_v25 = vpop.f32.mrb[0].mxu1 }
 0x100   :  { %v247_v27 = vmul.f32 2.0, %v133_v24  ;;  %v248_v28 = vmul.f32 2.0, %v209_v25  ;;  %v286_v29 = vpop.f32.mrb[1].mxu0  ;;  %v291_v30 = vpop.f32.mrb[1].mxu1 }
 0x102   :  { %v249_v31 = vsub.f32 %v245_v26, %v247_v27  ;;  %v250_v32 = vsub.f32 %v246_v23, %v248_v28 }
 0x104   :  { %v251_v33 = vmax.f32 %v249_v31, 0.0  ;;  %v252_v34 = vmax.f32 %v250_v32, 0.0 }
 0x106   :  { %254 = vst.msk [vmem:[#allocation7] sm:$0xff] %vm253_vm2, %v251_v33  ;;  %255 = vst.msk [vmem:[#allocation7 + $0x8] sm:$0xff] %vm253_vm2, %v252_v34 }
 0x107   :  { %354 = shalt.err (!%p351_p6)
}
 0x108   :  { %s355_s10 = scalar_lea.hbm %s448_s2, 256 }
 0x109   :  { %p356_p7 = scmp.ne.s32.totalorder %s448_s2, %s355_s10  ;;  %p359_p8 = scmp.lt.u32.totalorder %s355_s10, %s448_s2 }
 0x10b   :  { %p361_p9 = pnand %p359_p8, %p356_p7 }
 0x10d   :  { %364 = shalt.err (!%p361_p9)
}
 0x10e   :  { %267 = dma.vmem_to_hbm [thread:$0]  %s262_s6, 256, %s448_s2, [#allocation4], %s372_s19, %s372_s19, %s373_s20  }
 0x10f   :  { %369 = dma.done.wait [#allocation4], 256  }
 0x110   :  { %370 = vsyncadd [#allocation4], 4294967040 }
 0x111   :  { %271 = vsyncpa [#allocation3], 1 }
 0x112   :  { %272 = vsyncpa [#allocation6], 1 }
 0x113   :  { %273 = vsyncpa [#allocation4], 1 }

</bundles_post_ra>
